<compile_context>
chip_gen: v7x
topology: tpu7x:2x2x1
jax: 0.10.0
libtpu: 0.0.40
codegen_flags: <defaults>
</compile_context>

<pallas_src>
import jax
import jax.numpy as jnp
from jax.experimental import pallas as pl
from jax.experimental.pallas import tpu as pltpu

LANES = 128          # vreg lane width
SUBLANES = 8         # f32 sublane count -> pad granularity 8*128 = 1024 elems
TILE_ROWS = 512      # 512x128 f32 = 256 KiB per buffer; VMEM-safe on v5e/v6e/v7x
_FAST_PATH_MAX_BYTES = 1 << 20   # below ~1 MiB the launch overhead dominates


def _copy_kernel(x_ref, o_ref):
    # Elementwise identity: load the VMEM tile, store it back out.
    o_ref[...] = x_ref[...]


def _identity_kernel_call(x):
    """Run the identity copy through Pallas on a lane-dense (rows, 128) slab."""
    orig_shape = x.shape
    orig_dtype = x.dtype
    n = x.size

    flat = x.reshape(-1)
    tile_elems = SUBLANES * LANES  # 1024
    pad = (-n) % tile_elems
    if pad:
        # Pad to a full (8, 128) tile so every store is a full unmasked vst.
        flat = jnp.pad(flat, (0, pad))
    rows = flat.size // LANES
    x2d = flat.reshape(rows, LANES)

    if rows <= TILE_ROWS:
        # Small input: single-shot VMEM copy, no grid bookkeeping.
        out2d = pl.pallas_call(
            _copy_kernel,
            out_shape=jax.ShapeDtypeStruct((rows, LANES), orig_dtype),
            in_specs=[pl.BlockSpec(memory_space=pltpu.MemorySpace.VMEM)],
            out_specs=pl.BlockSpec(memory_space=pltpu.MemorySpace.VMEM),
            input_output_aliases={0: 0},
        )(x2d)
    else:
        # Large input: 1-D row grid, (TILE_ROWS, 128) tiles, software-pipelined.
        grid = (pl.cdiv(rows, TILE_ROWS),)
        out2d = pl.pallas_call(
            _copy_kernel,
            out_shape=jax.ShapeDtypeStruct((rows, LANES), orig_dtype),
            grid_spec=pltpu.PrefetchScalarGridSpec(
                num_scalar_prefetch=0,
                grid=grid,
                in_specs=[pl.BlockSpec((TILE_ROWS, LANES), lambda i: (i, 0))],
                out_specs=pl.BlockSpec((TILE_ROWS, LANES), lambda i: (i, 0)),
            ),
            input_output_aliases={0: 0},
            compiler_params=pltpu.CompilerParams(
                dimension_semantics=("parallel",),  # shard rows across TCs on v7x
            ),
        )(x2d)

    out_flat = out2d.reshape(-1)
    if pad:
        out_flat = out_flat[:n]
    return out_flat.reshape(orig_shape)


def identity_pallas(x, *, force_kernel=False):
    """Pallas identity forward matching MyModel.forward (returns x).

    For tiny inputs the identity is free in XLA, so by default we skip the
    Pallas launch entirely; set force_kernel=True to exercise the kernel path.
    """
    nbytes = x.size * x.dtype.itemsize
    if not force_kernel and nbytes < _FAST_PATH_MAX_BYTES:
        return x
    return _identity_kernel_call(x)


if __name__ == "__main__":
    key = jax.random.PRNGKey(0)
    # Small NCHW input consistent with the module's forward signature.
    x = jax.random.normal(key, (2, 4, 16, 16), dtype=jnp.float32)

    # Force the kernel path so the Pallas copy is actually executed and checked.
    y = identity_pallas(x, force_kernel=True)
    jax.block_until_ready(y)

    # Verify exact identity semantics.
    assert y.shape == x.shape and y.dtype == x.dtype
    assert bool(jnp.all(y == x))

    # Also sanity-check the default (fast-path) wrapper behaviour.
    y_fast = identity_pallas(x)
    jax.block_until_ready(y_fast)
    assert bool(jnp.all(y_fast == x))

    print("KERNEL_OK")
</pallas_src>

<mosaic_0001>
module attributes {stable_mosaic.version = 11 : i64} {
  func.func @_copy_kernel(%arg0: memref<16x128xf32, #tpu.memory_space<vmem>>, %arg1: memref<16x128xf32, #tpu.memory_space<vmem>>) attributes {dimension_semantics = [], scalar_prefetch = 0 : i64, scratch_operands = 0 : i64, tpu.core_type = #tpu.core_type<tc>} {
    %c0 = arith.constant 0 : index
    %c0_0 = arith.constant 0 : index
    %0 = vector.load %arg0[%c0, %c0_0] : memref<16x128xf32, #tpu.memory_space<vmem>>, vector<16x128xf32>
    %c0_1 = arith.constant 0 : index
    %c0_2 = arith.constant 0 : index
    %1 = vector.load %arg1[%c0_1, %c0_2] : memref<16x128xf32, #tpu.memory_space<vmem>>, vector<16x128xf32>
    tpu.vector_store %arg1[%c0_1, %c0_2], %0 {strides = array<i32>} : memref<16x128xf32, #tpu.memory_space<vmem>>, vector<16x128xf32>,
    return
  }
}

</mosaic_0001>

<bundles_post_ra>
// kernel: tpu_custom_call.1
= control target key start
LH: loop header
LB: loop body
LE: loop exit
PB: predicated region body
PF: predicated region fallthrough
CT: control target
= control target key end

     0   :  { %6 = vsyncpa [#allocation3], 0  ;;  %s134_s0 = inlined_call_operand.hbm [shape: f32[16,128], index: 0, kind: input, shape index: {}, may-alias: {0,1}]   ;;  %s135_s1 = inlined_call_operand.hbm [shape: f32[16,128], index: 1, kind: output, shape index: {}, may-alias: {0,1}]  }
   0x1   :  { %7 = vsyncpa [#allocation4], 0  ;;  %s96_s6 = smov [#allocation2]   ;;  %s48_s10 = scalar_lea.hbm %s134_s0, 256 }
   0x2   :  { %s13_s7 = sshll.u32 %s96_s6, 4  ;;  %p49_p0 = scmp.ne.s32.totalorder %s134_s0, %s48_s10  ;;  %s14_s7 = int_to_ptr.vmem [resolvable:$true] %s13_s7 }
   0x3   :  { %p52_p1 = scmp.lt.u32.totalorder %s48_s10, %s134_s0 }
   0x5   :  { %p54_p2 = pnand %p52_p1, %p49_p0 }
   0x7   :  { %57 = shalt.err (!%p54_p2)
}
   0x8   :  { %s58_s15 = scalar_lea.vmem %s14_s7, 256  ;;  %p63_p4 = scmp.lt.s32.totalorder %s14_s7, %s14_s7 }
   0x9   :  { %p59_p3 = scmp.ne.s32.totalorder %s14_s7, %s58_s15  ;;  %p64_p5 = scmp.lt.s32.totalorder %s58_s15, %s58_s15 }
   0xb   :  { %p65_p6 = por %p64_p5, %p63_p4 }
   0xd   :  { %p66_p7 = pnand %p65_p6, %p59_p3 }
   0xf   :  { %69 = shalt.err (!%p66_p7)
}
  0x10   :  { %s97_s16 = smov 128   ;;  %s98_s17 = smov 8  }
  0x11   :  { %19 = dma.hbm_to_vmem [thread:$0]  %s134_s0, 256, %s14_s7, [#allocation3], %s97_s16, %s97_s16, %s98_s17  }
  0x12   :  { %92 = dma.done.wait [#allocation3], 256  }
  0x13   :  { %93 = vsyncadd [#allocation3], 4294967040  ;;  %s99_s20 = smov [#allocation5]   ;;  %v23_v0 = vld [vmem:[#allocation2] sm:$0xff]  ;;  %v24_v1 = vld [vmem:[#allocation2 + $0x8] sm:$0xff] }
  0x14   :  { %s32_s21 = sshll.u32 %s99_s20, 4  ;;  %25 = vst [vmem:[#allocation5] sm:$0xff] %v23_v0  ;;  %26 = vst [vmem:[#allocation5 + $0x8] sm:$0xff] %v24_v1  ;;  %s33_s21 = int_to_ptr.vmem [resolvable:$true] %s32_s21 }
  0x15   :  { %s70_s22 = scalar_lea.vmem %s33_s21, 256  ;;  %p75_p9 = scmp.lt.s32.totalorder %s33_s21, %s33_s21 }
  0x16   :  { %p71_p8 = scmp.ne.s32.totalorder %s33_s21, %s70_s22  ;;  %p76_p10 = scmp.lt.s32.totalorder %s70_s22, %s70_s22 }
  0x18   :  { %p77_p11 = por %p76_p10, %p75_p9 }
  0x1a   :  { %p78_p12 = pnand %p77_p11, %p71_p8 }
  0x1c   :  { %81 = shalt.err (!%p78_p12)
}
  0x1d   :  { %s82_s0 = scalar_lea.hbm %s135_s1, 256 }
  0x1e   :  { %p83_p13 = scmp.ne.s32.totalorder %s135_s1, %s82_s0  ;;  %p86_p0 = scmp.lt.u32.totalorder %s82_s0, %s135_s1 }
  0x20   :  { %p88_p1 = pnand %p86_p0, %p83_p13 }
  0x22   :  { %91 = shalt.err (!%p88_p1)
}
  0x23   :  { %38 = dma.vmem_to_hbm [thread:$0]  %s33_s21, 256, %s135_s1, [#allocation4], %s97_s16, %s97_s16, %s98_s17  }
  0x24   :  { %94 = dma.done.wait [#allocation4], 256  }
  0x25   :  { %95 = vsyncadd [#allocation4], 4294967040 }
  0x26   :  { %42 = vsyncpa [#allocation3], 1 }
  0x27   :  { %43 = vsyncpa [#allocation4], 1 }

</bundles_post_ra>
